<compile_context>
chip_gen: v7x
topology: tpu7x:2x2x1
jax: 0.10.0
libtpu: 0.0.40
codegen_flags: <defaults>
</compile_context>

<pallas_src>
import functools

import jax
import jax.numpy as jnp
from jax.experimental import pallas as pl
from jax.experimental.pallas import tpu as pltpu

HIDDEN = 64   # fixed by the module definition
LANES = 128   # TPU lane width; all weights/biases padded to this many columns


def _actor_kernel(s_ref, w1_ref, w23_ref, b_ref, out_ref, *, action_dim):
    # layer 1: Linear(state_dim, 64) + ReLU  (cols 64..127 of w1/b1 are zero,
    # so padded hidden lanes stay exactly 0 through the whole network)
    h = jnp.dot(s_ref[...], w1_ref[...], preferred_element_type=jnp.float32)
    h = jnp.maximum(h + b_ref[0:1, :], 0.0)
    # layer 2: Linear(64, 64) + ReLU
    h = jnp.dot(h, w23_ref[0], preferred_element_type=jnp.float32)
    h = jnp.maximum(h + b_ref[1:2, :], 0.0)
    # fused heads: one matmul producing [mu | sigma_logit | zero-pad] lanes
    raw = jnp.dot(h, w23_ref[1], preferred_element_type=jnp.float32) + b_ref[2:3, :]
    lane = jax.lax.broadcasted_iota(jnp.int32, raw.shape, 1)
    # lanes <  action_dim : mu (identity)
    # lanes >= action_dim : exp() (sigma lanes; padded lanes give exp(0)=1,
    #                       discarded by the wrapper slice)
    out_ref[...] = jnp.where(lane < action_dim, raw, jnp.exp(raw))


def _pick_batch_tile(B):
    """Largest nice batch tile that divides B; else single full block."""
    for tb in (512, 256, 128):
        if B % tb == 0:
            return tb
    return B


def actor_forward(state, packed, action_dim):
    """state: (B, state_dim) f32; packed: dict from pack_actor_params."""
    B, state_dim = state.shape
    TB = _pick_batch_tile(B)
    nb = B // TB

    kernel = functools.partial(_actor_kernel, action_dim=action_dim)

    flops = 2 * B * (state_dim * LANES + 2 * LANES * LANES)
    bytes_accessed = 4 * (B * state_dim + state_dim * LANES
                          + 2 * LANES * LANES + 3 * LANES + B * LANES)

    out = pl.pallas_call(
        kernel,
        out_shape=jax.ShapeDtypeStruct((B, LANES), jnp.float32),
        grid=(nb,),
        in_specs=[
            pl.BlockSpec((TB, state_dim), lambda i: (i, 0)),       # state tile
            pl.BlockSpec((state_dim, LANES), lambda i: (0, 0)),    # W1 (padded)
            pl.BlockSpec((2, LANES, LANES), lambda i: (0, 0, 0)),  # W2 | Whead slab
            pl.BlockSpec((3, LANES), lambda i: (0, 0)),            # bias slab
        ],
        out_specs=pl.BlockSpec((TB, LANES), lambda i: (i, 0)),
        compiler_params=pltpu.CompilerParams(
            dimension_semantics=("parallel",)),
        cost_estimate=pl.CostEstimate(
            flops=flops, transcendentals=B * LANES,
            bytes_accessed=bytes_accessed),
    )(state, packed["w1"], packed["w23"], packed["b"])

    mu = out[:, :action_dim]
    sigma = out[:, action_dim:2 * action_dim]
    return mu, sigma


def init_actor_params(key, state_dim, action_dim):
    """Raw params mimicking nn.Linear default init (U[-1/sqrt(fan_in), ...]).

    Weights stored as (in_features, out_features) (transpose of PyTorch)."""
    def linear(key, fan_in, fan_out):
        kw, kb = jax.random.split(key)
        bound = 1.0 / jnp.sqrt(fan_in)
        w = jax.random.uniform(kw, (fan_in, fan_out), jnp.float32, -bound, bound)
        b = jax.random.uniform(kb, (1, fan_out), jnp.float32, -bound, bound)
        return w, b

    k1, k2, k3, k4 = jax.random.split(key, 4)
    w1, b1 = linear(k1, state_dim, HIDDEN)
    w2, b2 = linear(k2, HIDDEN, HIDDEN)
    wmu, bmu = linear(k3, HIDDEN, action_dim)
    wsg, bsg = linear(k4, HIDDEN, action_dim)
    return dict(w1=w1, b1=b1, w2=w2, b2=b2,
                wmu=wmu, bmu=bmu, wsg=wsg, bsg=bsg)


def pack_actor_params(p, state_dim, action_dim):
    """One-time packing into padded, lane-dense kernel operands."""
    assert 2 * action_dim <= LANES, "packed heads require 2*action_dim <= 128"
    H, A = HIDDEN, action_dim
    w1 = jnp.zeros((state_dim, LANES), jnp.float32).at[:, :H].set(p["w1"])
    w2 = jnp.zeros((LANES, LANES), jnp.float32).at[:H, :H].set(p["w2"])
    wh = (jnp.zeros((LANES, LANES), jnp.float32)
          .at[:H, :A].set(p["wmu"])
          .at[:H, A:2 * A].set(p["wsg"]))
    w23 = jnp.stack([w2, wh], axis=0)                  # (2, 128, 128)
    b = (jnp.zeros((3, LANES), jnp.float32)
         .at[0, :H].set(p["b1"][0])
         .at[1, :H].set(p["b2"][0])
         .at[2, :A].set(p["bmu"][0])
         .at[2, A:2 * A].set(p["bsg"][0]))             # (3, 128)
    return dict(w1=w1, w23=w23, b=b)


def actor_reference(state, p):
    """Pure-JAX reference matching the PyTorch forward (raw params)."""
    x = jnp.maximum(state @ p["w1"] + p["b1"], 0.0)
    x = jnp.maximum(x @ p["w2"] + p["b2"], 0.0)
    mu = x @ p["wmu"] + p["bmu"]
    sigma = jnp.exp(x @ p["wsg"] + p["bsg"])
    return mu, sigma


if __name__ == "__main__":
    key = jax.random.PRNGKey(0)
    k_state, k_params, k_big = jax.random.split(key, 3)

    state_dim, action_dim = 32, 8
    raw = init_actor_params(k_params, state_dim, action_dim)
    packed = pack_actor_params(raw, state_dim, action_dim)

    fwd = jax.jit(actor_forward, static_argnames=("action_dim",))

    # small batch: single full-block path
    B = 8
    state = jax.random.normal(k_state, (B, state_dim), jnp.float32)
    mu, sigma = fwd(state, packed, action_dim=action_dim)
    jax.block_until_ready((mu, sigma))
    mu_r, sg_r = actor_reference(state, raw)
    assert mu.shape == (B, action_dim) and sigma.shape == (B, action_dim)
    assert jnp.allclose(mu, mu_r, atol=1e-4, rtol=1e-4)
    assert jnp.allclose(sigma, sg_r, atol=1e-4, rtol=1e-4)
    assert bool(jnp.all(sigma > 0.0))

    # large batch: exercises the batch-tiled ("parallel") grid path
    Bb = 1024
    state_b = jax.random.normal(k_big, (Bb, state_dim), jnp.float32)
    mu_b, sigma_b = fwd(state_b, packed, action_dim=action_dim)
    jax.block_until_ready((mu_b, sigma_b))
    mu_br, sg_br = actor_reference(state_b, raw)
    assert jnp.allclose(mu_b, mu_br, atol=1e-4, rtol=1e-4)
    assert jnp.allclose(sigma_b, sg_br, atol=1e-4, rtol=1e-4)
    assert bool(jnp.all(sigma_b > 0.0))

    print("KERNEL_OK")
</pallas_src>

<mosaic_0001>
module attributes {stable_mosaic.version = 11 : i64} {
  func.func @_actor_kernel(%arg0: i32, %arg1: memref<8x32xf32, #tpu.memory_space<vmem>>, %arg2: memref<32x128xf32, #tpu.memory_space<vmem>>, %arg3: memref<2x128x128xf32, #tpu.memory_space<vmem>>, %arg4: memref<3x128xf32, #tpu.memory_space<vmem>>, %arg5: memref<8x128xf32, #tpu.memory_space<vmem>>) attributes {dimension_semantics = [#tpu.dimension_semantics<parallel>], iteration_bounds = array<i64: 1>, scalar_prefetch = 0 : i64, scratch_operands = 0 : i64, tpu.core_type = #tpu.core_type<tc>, window_params = [{transform_indices = @transform_0, window_bounds = array<i64: 8, 32>}, {pipeline_mode = #tpu.pipeline_mode<synchronous>, transform_indices = @transform_1, window_bounds = array<i64: 32, 128>}, {pipeline_mode = #tpu.pipeline_mode<synchronous>, transform_indices = @transform_2, window_bounds = array<i64: 2, 128, 128>}, {pipeline_mode = #tpu.pipeline_mode<synchronous>, transform_indices = @transform_3, window_bounds = array<i64: 3, 128>}, {transform_indices = @transform_4, window_bounds = array<i64: 8, 128>}]} {
    %c0 = arith.constant 0 : index
    %c0_0 = arith.constant 0 : index
    %0 = vector.load %arg1[%c0, %c0_0] : memref<8x32xf32, #tpu.memory_space<vmem>>, vector<8x32xf32>
    %c0_1 = arith.constant 0 : index
    %c0_2 = arith.constant 0 : index
    %1 = vector.load %arg2[%c0_1, %c0_2] : memref<32x128xf32, #tpu.memory_space<vmem>>, vector<32x128xf32>
    %cst = arith.constant dense<0.000000e+00> : vector<8x128xf32>
    %2 = tpu.matmul %0, %1, %cst {dimension_numbers = #tpu.dot_dimension_numbers<[1], [0], [0], [1], [0, 0, 1, 1], [], []>} : vector<8x32xf32>, vector<32x128xf32>, vector<8x128xf32> -> vector<8x128xf32>
    %c0_3 = arith.constant 0 : index
    %c0_4 = arith.constant 0 : index
    %3 = vector.load %arg4[%c0_3, %c0_4] : memref<3x128xf32, #tpu.memory_space<vmem>>, vector<1x128xf32>
    %4 = vector.broadcast %3 : vector<1x128xf32> to vector<8x128xf32>
    %5 = arith.addf %2, %4 : vector<8x128xf32>
    %cst_5 = arith.constant 0.000000e+00 : f32
    %6 = vector.broadcast %cst_5 : f32 to vector<8x128xf32>
    %7 = arith.maximumf %5, %6 : vector<8x128xf32>
    %c0_6 = arith.constant 0 : index
    %c0_7 = arith.constant 0 : index
    %c0_8 = arith.constant 0 : index
    %8 = vector.load %arg3[%c0_6, %c0_7, %c0_8] : memref<2x128x128xf32, #tpu.memory_space<vmem>>, vector<1x128x128xf32>
    %9 = vector.shape_cast %8 : vector<1x128x128xf32> to vector<128x128xf32>
    %cst_9 = arith.constant dense<0.000000e+00> : vector<8x128xf32>
    %10 = tpu.matmul %7, %9, %cst_9 {dimension_numbers = #tpu.dot_dimension_numbers<[1], [0], [0], [1], [0, 0, 1, 1], [], []>} : vector<8x128xf32>, vector<128x128xf32>, vector<8x128xf32> -> vector<8x128xf32>
    %c1 = arith.constant 1 : index
    %c0_10 = arith.constant 0 : index
    %11 = vector.load %arg4[%c1, %c0_10] : memref<3x128xf32, #tpu.memory_space<vmem>>, vector<1x128xf32>
    %12 = vector.broadcast %11 : vector<1x128xf32> to vector<8x128xf32>
    %13 = arith.addf %10, %12 : vector<8x128xf32>
    %cst_11 = arith.constant 0.000000e+00 : f32
    %14 = vector.broadcast %cst_11 : f32 to vector<8x128xf32>
    %15 = arith.maximumf %13, %14 : vector<8x128xf32>
    %c1_12 = arith.constant 1 : index
    %c0_13 = arith.constant 0 : index
    %c0_14 = arith.constant 0 : index
    %16 = vector.load %arg3[%c1_12, %c0_13, %c0_14] : memref<2x128x128xf32, #tpu.memory_space<vmem>>, vector<1x128x128xf32>
    %17 = vector.shape_cast %16 : vector<1x128x128xf32> to vector<128x128xf32>
    %cst_15 = arith.constant dense<0.000000e+00> : vector<8x128xf32>
    %18 = tpu.matmul %15, %17, %cst_15 {dimension_numbers = #tpu.dot_dimension_numbers<[1], [0], [0], [1], [0, 0, 1, 1], [], []>} : vector<8x128xf32>, vector<128x128xf32>, vector<8x128xf32> -> vector<8x128xf32>
    %c2 = arith.constant 2 : index
    %c0_16 = arith.constant 0 : index
    %19 = vector.load %arg4[%c2, %c0_16] : memref<3x128xf32, #tpu.memory_space<vmem>>, vector<1x128xf32>
    %20 = vector.broadcast %19 : vector<1x128xf32> to vector<8x128xf32>
    %21 = arith.addf %18, %20 : vector<8x128xf32>
    %22 = tpu.iota {dimensions = array<i32: 1>} : vector<8x128xi32>
    %c8_i32 = arith.constant 8 : i32
    %23 = vector.broadcast %c8_i32 : i32 to vector<8x128xi32>
    %24 = arith.cmpi slt, %22, %23 : vector<8x128xi32>
    %25 = math.exp %21 : vector<8x128xf32>
    %26 = arith.select %24, %21, %25 : vector<8x128xi1>, vector<8x128xf32>
    %c0_17 = arith.constant 0 : index
    %c0_18 = arith.constant 0 : index
    %27 = vector.load %arg5[%c0_17, %c0_18] : memref<8x128xf32, #tpu.memory_space<vmem>>, vector<8x128xf32>
    tpu.vector_store %arg5[%c0_17, %c0_18], %26 {strides = array<i32>} : memref<8x128xf32, #tpu.memory_space<vmem>>, vector<8x128xf32>,
    return
  }
  func.func @transform_0(%arg0: i32) -> (i32, i32) {
    %c0_i32 = arith.constant 0 : i32
    %c0_i32_0 = arith.constant 0 : i32
    return %arg0, %c0_i32 : i32, i32
  }
  func.func @transform_1(%arg0: i32) -> (i32, i32) {
    %c0_i32 = arith.constant 0 : i32
    %c0_i32_0 = arith.constant 0 : i32
    %c0_i32_1 = arith.constant 0 : i32
    return %c0_i32, %c0_i32_0 : i32, i32
  }
  func.func @transform_2(%arg0: i32) -> (i32, i32, i32) {
    %c0_i32 = arith.constant 0 : i32
    %c0_i32_0 = arith.constant 0 : i32
    %c0_i32_1 = arith.constant 0 : i32
    %c0_i32_2 = arith.constant 0 : i32
    return %c0_i32, %c0_i32_0, %c0_i32_1 : i32, i32, i32
  }
  func.func @transform_3(%arg0: i32) -> (i32, i32) {
    %c0_i32 = arith.constant 0 : i32
    %c0_i32_0 = arith.constant 0 : i32
    %c0_i32_1 = arith.constant 0 : i32
    return %c0_i32, %c0_i32_0 : i32, i32
  }
  func.func @transform_4(%arg0: i32) -> (i32, i32) {
    %c0_i32 = arith.constant 0 : i32
    %c0_i32_0 = arith.constant 0 : i32
    return %arg0, %c0_i32 : i32, i32
  }
}

</mosaic_0001>

<bundles_post_ra>
// kernel: actor_forward.1
= control target key start
LH: loop header
LB: loop body
LE: loop exit
PB: predicated region body
PF: predicated region fallthrough
CT: control target
= control target key end

     0   :  { %9 = vsyncpa [#allocation3], 0  ;;  %s746_s0 = inlined_call_operand.hbm [shape: f32[8,32], index: 0, kind: input, shape index: {}]   ;;  %s747_s1 = inlined_call_operand.hbm [shape: f32[32,128], index: 1, kind: input, shape index: {}]   ;;  %s748_s2 = inlined_call_operand.hbm [shape: f32[2,128,128], index: 2, kind: input, shape index: {}]   ;;  %s749_s3 = inlined_call_operand.hbm [shape: f32[3,128], index: 3, kind: input, shape index: {}]   ;;  %s750_s4 = inlined_call_operand.vmem [shape: f32[8,128], index: 4, kind: output, shape index: {}]  }
   0x1   :  { %10 = vsyncpa [#allocation5], 0 }
   0x2   :  { %11 = vsyncpa [#allocation8], 0  ;;  %s634_s15 = smov [#allocation4]   ;;  %s540_s19 = scalar_lea.hbm %s747_s1, 512 }
   0x3   :  { %s27_s16 = sshll.u32 %s634_s15, 4  ;;  %p541_p0 = scmp.ne.s32.totalorder %s747_s1, %s540_s19  ;;  %s28_s16 = int_to_ptr.vmem [resolvable:$true] %s27_s16 }
   0x4   :  { %p544_p1 = scmp.lt.u32.totalorder %s540_s19, %s747_s1 }
   0x6   :  { %p546_p2 = pnand %p544_p1, %p541_p0 }
   0x8   :  { %549 = shalt.err (!%p546_p2)
}
   0x9   :  { %s550_s24 = scalar_lea.vmem %s28_s16, 512  ;;  %p555_p4 = scmp.lt.s32.totalorder %s28_s16, %s28_s16 }
   0xa   :  { %p551_p3 = scmp.ne.s32.totalorder %s28_s16, %s550_s24  ;;  %p556_p5 = scmp.lt.s32.totalorder %s550_s24, %s550_s24 }
   0xc   :  { %p557_p6 = por %p556_p5, %p555_p4 }
   0xe   :  { %p558_p7 = pnand %p557_p6, %p551_p3 }
  0x10   :  { %561 = shalt.err (!%p558_p7)
}
  0x11   :  { %s635_s25 = smov 128   ;;  %s636_s26 = smov 8  }
  0x12   :  { %33 = dma.hbm_to_vmem [thread:$0]  %s747_s1, 512, %s28_s16, [#allocation5], %s635_s25, %s635_s25, %s636_s26  }
  0x13   :  { %s637_s29 = smov [#allocation2]   ;;  %s638_s5 = smov [#allocation6]  }
  0x14   :  { %s18_s30 = sshll.u32 %s637_s29, 4  ;;  %s39_s6 = sshll.u32 %s638_s5, 4  ;;  %s19_s30 = int_to_ptr.vmem [resolvable:$true] %s18_s30  ;;  %s40_s6 = int_to_ptr.vmem [resolvable:$true] %s39_s6 }
  0x15   :  { %s562_s9 = scalar_lea.hbm %s746_s0, 128 }
  0x16   :  { %p563_p8 = scmp.ne.s32.totalorder %s746_s0, %s562_s9  ;;  %p566_p9 = scmp.lt.u32.totalorder %s562_s9, %s746_s0 }
  0x18   :  { %p568_p10 = pnand %p566_p9, %p563_p8 }
  0x1a   :  { %571 = shalt.err (!%p568_p10)
}
  0x1b   :  { %s572_s1 = scalar_lea.vmem %s19_s30, 128  ;;  %p577_p12 = scmp.lt.s32.totalorder %s19_s30, %s19_s30 }
  0x1c   :  { %p573_p11 = scmp.ne.s32.totalorder %s19_s30, %s572_s1  ;;  %p578_p13 = scmp.lt.s32.totalorder %s572_s1, %s572_s1 }
  0x1e   :  { %p579_p0 = por %p578_p13, %p577_p12 }
  0x20   :  { %p580_p1 = pnand %p579_p0, %p573_p11 }
  0x22   :  { %583 = shalt.err (!%p580_p1)
}
  0x23   :  { %21 = dma.hbm_to_vmem [thread:$0]  %s746_s0, 128, %s19_s30, [#allocation3]  }
  0x24   :  { %s584_s18 = scalar_lea.hbm %s748_s2, 4096 }
  0x25   :  { %p585_p2 = scmp.ne.s32.totalorder %s748_s2, %s584_s18  ;;  %p588_p3 = scmp.lt.u32.totalorder %s584_s18, %s748_s2 }
  0x27   :  { %p590_p4 = pnand %p588_p3, %p585_p2 }
  0x29   :  { %593 = shalt.err (!%p590_p4)
}
  0x2a   :  { %s594_s23 = scalar_lea.vmem %s40_s6, 4096  ;;  %p599_p6 = scmp.lt.s32.totalorder %s40_s6, %s40_s6 }
  0x2b   :  { %p595_p5 = scmp.ne.s32.totalorder %s40_s6, %s594_s23  ;;  %p600_p7 = scmp.lt.s32.totalorder %s594_s23, %s594_s23 }
  0x2d   :  { %p601_p8 = por %p600_p7, %p599_p6 }
  0x2f   :  { %p602_p9 = pnand %p601_p8, %p595_p5 }
  0x31   :  { %605 = shalt.err (!%p602_p9)
}
  0x32   :  { %45 = dma.hbm_to_vmem [thread:$0]  %s748_s2, 4096, %s40_s6, [#allocation5], %s635_s25, %s635_s25, %s636_s26  }
  0x33   :  { %s639_s27 = smov [#allocation7]   ;;  %s606_s5 = scalar_lea.hbm %s749_s3, 64 }
  0x34   :  { %s52_s28 = sshll.u32 %s639_s27, 4  ;;  %p607_p10 = scmp.ne.s32.totalorder %s749_s3, %s606_s5  ;;  %s53_s28 = int_to_ptr.vmem [resolvable:$true] %s52_s28 }
  0x35   :  { %p610_p11 = scmp.lt.u32.totalorder %s606_s5, %s749_s3 }
  0x37   :  { %p612_p12 = pnand %p610_p11, %p607_p10 }
  0x39   :  { %615 = shalt.err (!%p612_p12)
}
  0x3a   :  { %s616_s11 = scalar_lea.vmem %s53_s28, 64  ;;  %p621_p0 = scmp.lt.s32.totalorder %s53_s28, %s53_s28 }
  0x3b   :  { %p617_p13 = scmp.ne.s32.totalorder %s53_s28, %s616_s11  ;;  %p622_p1 = scmp.lt.s32.totalorder %s616_s11, %s616_s11 }
  0x3d   :  { %p623_p2 = por %p622_p1, %p621_p0 }
  0x3f   :  { %p624_p3 = pnand %p623_p2, %p617_p13 }
  0x41   :  { %627 = shalt.err (!%p624_p3)
}
  0x42   :  { %55 = dma.hbm_to_vmem [thread:$0]  %s749_s3, 64, %s53_s28, [#allocation8]  }
  0x43   :  { %628 = dma.done.wait [#allocation3], 128  }
  0x44   :  { %629 = vsyncadd [#allocation3], 4294967168 }
  0x45   :  { %630 = dma.done.wait [#allocation5], 4608  }
  0x46   :  { %631 = vsyncadd [#allocation5], 4294962688 }
  0x47   :  { %632 = dma.done.wait [#allocation8], 64  }
  0x48   :  { %633 = vsyncadd [#allocation8], 4294967232  ;;  %v640_v0 = vmov 0.0|0.0   ;;  %vm641_vm0 = vmmov 0   ;;  %v642_v1 = vmov 0.0   ;;  %v69_v2 = vld [vmem:[#allocation4] sm:$0xff] }
  0x49   :  { %475 = vmatprep.subr.bf16.mxu0 %v640_v0  ;;  %402 = vmatprep.mubr.msk.f32.mxu0 %vm641_vm0, %v642_v1  ;;  %v70_v3 = vld [vmem:[#allocation4 + $0x8] sm:$0xff]  ;;  %v71_v4 = vld [vmem:[#allocation4 + $0x10] sm:$0xff]  ;;  %v72_v6 = vld [vmem:[#allocation4 + $0x18] sm:$0xff]  ;;  %vm78_vm1 = vcmask 261120  }
  0x4a   :  { %481 = vmatprep.subr.bf16.mxu1 %v640_v0  ;;  %437 = vmatprep.mubr.msk.f32.mxu1 %vm641_vm0, %v642_v1  ;;  %v476_v5 = vpack.c.bf16 %v70_v3, %v69_v2  ;;  %v153_v7 = vld [vmem:[#allocation6] sm:$0xff]  ;;  %v154_v8 = vld [vmem:[#allocation6 + $0x8] sm:$0xff]  ;;  %v155_v9 = vld [vmem:[#allocation6 + $0x10] sm:$0xff]  ;;  %v479_v11 = vpack.c.bf16 %v72_v6, %v71_v4 }
  0x4b   :  { %v156_v10 = vld [vmem:[#allocation6 + $0x18] sm:$0xff]  ;;  %v482_v12 = vpack.c.bf16 %v154_v8, %v153_v7  ;;  %v157_v14 = vld [vmem:[#allocation6 + $0x20] sm:$0xff]  ;;  %v158_v15 = vld [vmem:[#allocation6 + $0x28] sm:$0xff]  ;;  %v337_v8 = vlaneseq }
  0x4c   :  { %477 = vmatpush3.bf16.msra.mxu0 %v476_v5  ;;  %v485_v13 = vpack.c.bf16 %v156_v10, %v155_v9  ;;  %v68_v16 = vld [vmem:[#allocation2] sm:$0xff]  ;;  %v488_v17 = vpack.c.bf16 %v158_v15, %v157_v14  ;;  %v159_v18 = vld [vmem:[#allocation6 + $0x30] sm:$0xff]  ;;  %v161_v21 = vld [vmem:[#allocation6 + $0x40] sm:$0xff] }
  0x4d   :  { %478 = vmatprep.subr.bf16.mxu0 %v640_v0  ;;  %483 = vmatpush3.bf16.msra.mxu1 %v482_v12  ;;  %v160_v19 = vld [vmem:[#allocation6 + $0x38] sm:$0xff]  ;;  %v162_v22 = vld [vmem:[#allocation6 + $0x48] sm:$0xff]  ;;  %v163_v24 = vld [vmem:[#allocation6 + $0x50] sm:$0xff]  ;;  %v338_v9 = vand.u32 127, %v337_v8 }
  0x4e   :  { %484 = vmatprep.subr.bf16.mxu1 %v640_v0  ;;  %v491_v20 = vpack.c.bf16 %v160_v19, %v159_v18  ;;  %v494_v23 = vpack.c.bf16 %v162_v22, %v161_v21  ;;  %v164_v25 = vld [vmem:[#allocation6 + $0x58] sm:$0xff]  ;;  %v165_v27 = vld [vmem:[#allocation6 + $0x60] sm:$0xff]  ;;  %v166_v28 = vld [vmem:[#allocation6 + $0x68] sm:$0xff] }
  0x4f   :  { %v497_v26 = vpack.c.bf16 %v164_v25, %v163_v24  ;;  %v500_v29 = vpack.c.bf16 %v166_v28, %v165_v27  ;;  %v167_v30 = vld [vmem:[#allocation6 + $0x70] sm:$0xff]  ;;  %v168_v31 = vld [vmem:[#allocation6 + $0x78] sm:$0xff]  ;;  %v246_v33 = vld [vmem:[#allocation6 + $0x80] sm:$0xff]  ;;  %vm339_vm2 = vcmp.lt.s32.totalorder %v338_v9, 8 }
  0x50   :  { %480 = vmatpush3.bf16.msra.mxu0 %v479_v11  ;;  %v503_v32 = vpack.c.bf16 %v168_v31, %v167_v30  ;;  %v247_v34 = vld [vmem:[#allocation6 + $0x88] sm:$0xff]  ;;  %v248_v35 = vld [vmem:[#allocation6 + $0x90] sm:$0xff]  ;;  %v249_v37 = vld [vmem:[#allocation6 + $0x98] sm:$0xff] }
  0x51   :  { %505 = vmatprep.subr.bf16.mxu0 %v640_v0  ;;  %486 = vmatpush3.bf16.msra.mxu1 %v485_v13  ;;  %v506_v36 = vpack.c.bf16 %v247_v34, %v246_v33  ;;  %v509_v38 = vpack.c.bf16 %v249_v37, %v248_v35  ;;  %v250_v39 = vld [vmem:[#allocation6 + $0xa0] sm:$0xff]  ;;  %v251_v40 = vld [vmem:[#allocation6 + $0xa8] sm:$0xff]  ;;  %v252_v42 = vld [vmem:[#allocation6 + $0xb0] sm:$0xff] }
  0x52   :  { %487 = vmatprep.subr.bf16.mxu1 %v640_v0  ;;  %v512_v41 = vpack.c.bf16 %v251_v40, %v250_v39  ;;  %v253_v43 = vld [vmem:[#allocation6 + $0xb8] sm:$0xff]  ;;  %v254_v45 = vld [vmem:[#allocation6 + $0xc0] sm:$0xff]  ;;  %v255_v46 = vld [vmem:[#allocation6 + $0xc8] sm:$0xff] }
  0x53   :  { %403 = vmatmul.mubr.msk.f32.vlgmr.msra.gmra.mrb[0].mxu0 %vm78_vm1, %v68_v16  ;;  %v515_v44 = vpack.c.bf16 %v253_v43, %v252_v42  ;;  %v518_v47 = vpack.c.bf16 %v255_v46, %v254_v45  ;;  %v256_v48 = vld [vmem:[#allocation6 + $0xd0] sm:$0xff]  ;;  %v257_v49 = vld [vmem:[#allocation6 + $0xd8] sm:$0xff]  ;;  %v258_v51 = vld [vmem:[#allocation6 + $0xe0] sm:$0xff] }
  0x54   :  { %472 = vmatprep.mubr.msk.f32.mxu0 %vm641_vm0, %v642_v1  ;;  %507 = vmatpush3.bf16.msra.mxu0 %v506_v36  ;;  %v521_v50 = vpack.c.bf16 %v257_v49, %v256_v48  ;;  %v259_v52 = vld [vmem:[#allocation6 + $0xe8] sm:$0xff]  ;;  %v351_v54 = vld [vmem:[#allocation7] ss:$0 sm:$0xff]  ;;  %v260_v59 = vld [vmem:[#allocation6 + $0xf0] sm:$0xff] }
  0x55   :  { %489 = vmatpush3.bf16.msra.mxu1 %v488_v17  ;;  %508 = vmatprep.subr.bf16.mxu0 %v640_v0  ;;  %v524_v53 = vpack.c.bf16 %v259_v52, %v258_v51  ;;  %v261_v60 = vld [vmem:[#allocation6 + $0xf8] sm:$0xff]  ;;  %v353_v62 = vld [vmem:[#allocation7 + $0x1] ss:$0 sm:$0xff]  ;;  %v354_v4 = vld [vmem:[#allocation7 + $0x2] ss:$0 sm:$0xff] }
  0x56   :  { %490 = vmatprep.subr.bf16.mxu1 %v640_v0  ;;  %v527_v61 = vpack.c.bf16 %v261_v60, %v260_v59 }
  0x58   :  { %510 = vmatpush3.bf16.msra.mxu0 %v509_v38 }
  0x59   :  { %492 = vmatpush3.bf16.msra.mxu1 %v491_v20  ;;  %511 = vmatprep.subr.bf16.mxu0 %v640_v0 }
  0x5a   :  { %493 = vmatprep.subr.bf16.mxu1 %v640_v0 }
  0x5c   :  { %513 = vmatpush3.bf16.msra.mxu0 %v512_v41 }
  0x5d   :  { %495 = vmatpush3.bf16.msra.mxu1 %v494_v23  ;;  %514 = vmatprep.subr.bf16.mxu0 %v640_v0 }
  0x5e   :  { %496 = vmatprep.subr.bf16.mxu1 %v640_v0 }
  0x60   :  { %516 = vmatpush3.bf16.msra.mxu0 %v515_v44 }
  0x61   :  { %498 = vmatpush3.bf16.msra.mxu1 %v497_v26  ;;  %517 = vmatprep.subr.bf16.mxu0 %v640_v0 }
  0x62   :  { %499 = vmatprep.subr.bf16.mxu1 %v640_v0 }
  0x64   :  { %519 = vmatpush3.bf16.msra.mxu0 %v518_v47 }
  0x65   :  { %501 = vmatpush3.bf16.msra.mxu1 %v500_v29  ;;  %520 = vmatprep.subr.bf16.mxu0 %v640_v0 }
  0x66   :  { %502 = vmatprep.subr.bf16.mxu1 %v640_v0 }
  0x68   :  { %522 = vmatpush3.bf16.msra.mxu0 %v521_v50 }
  0x69   :  { %504 = vmatpush3.bf16.msra.mxu1 %v503_v32  ;;  %523 = vmatprep.subr.bf16.mxu0 %v640_v0 }
  0x6c   :  { %525 = vmatpush3.bf16.msra.mxu0 %v524_v53 }
  0x6d   :  { %526 = vmatprep.subr.bf16.mxu0 %v640_v0 }
  0x70   :  { %528 = vmatpush3.bf16.msra.mxu0 %v527_v61 }
 0x126   :  { %v148_v55 = vpop.f32.mrb[0].mxu0 }
 0x127   :  { %v149_v56 = vadd.f32 %v351_v54, %v148_v55  ;;  %v404_v57 = vpop.f32.mrb[1].mxu0 }
 0x129   :  { %v152_v58 = vmax.f32 %v149_v56, 0.0 }
 0x12b   :  { %438 = vmatmul.mubr.f32.vlgmr.msra.gmra.mrb[0].mxu1 %v152_v58 }
 0x1fe   :  { %v240_v63 = vpop.f32.mrb[0].mxu1 }
 0x1ff   :  { %v241_v1 = vadd.f32 %v353_v62, %v240_v63  ;;  %v439_v2 = vpop.f32.mrb[1].mxu1 }
 0x201   :  { %v244_v3 = vmax.f32 %v241_v1, 0.0 }
 0x203   :  { %473 = vmatmul.mubr.f32.vlgmr.msra.gmra.mrb[2].mxu0 %v244_v3 }
 0x2d6   :  { %v333_v5 = vpop.f32.mrb[2].mxu0 }
 0x2d7   :  { %v334_v6 = vadd.f32 %v354_v4, %v333_v5  ;;  %v474_v0 = vpop.f32.mrb[3].mxu0 }
 0x2d9   :  { %v340_v7 = vmul.f32 1.442695, %v334_v6 }
 0x2db   :  { %538 = vpow2.f32 %v340_v7 }
 0x2e5   :  { %v539_v10 = vpop.eup %538 }
 0x2e6   :  { %v342_v11 = vsel %vm339_vm2, %v334_v6, %v539_v10 }
 0x2e7   :  { %343 = vst [vmem:[%s750_s4] sm:$0xff] %v342_v11 }
 0x2e8   :  { %348 = vsyncpa [#allocation3], 1 }
 0x2e9   :  { %349 = vsyncpa [#allocation5], 1 }
 0x2ea   :  { %350 = vsyncpa [#allocation8], 1 }

</bundles_post_ra>
